<compile_context>
chip_gen: v7x
topology: tpu7x:2x2x1
jax: 0.10.0
libtpu: 0.0.40
codegen_flags: <defaults>
</compile_context>

<pallas_src>
import jax
import jax.numpy as jnp
from jax.experimental import pallas as pl
from jax.experimental.pallas import tpu as pltpu


def residual_block_pallas(x_nchw, w1, b1, w2, b2):
    """x_nchw: (N, C, H, W) f32; w*: (C, C, 3, 3) torch OIHW; b*: (C,)."""
    N, Cin, H, W = x_nchw.shape
    Cout = w1.shape[0]
    assert Cin == Cout, "identity residual path requires in_dim == out_dim"
    C = Cin
    Hp, Wp = H + 2, W + 2
    HpWp = Hp * Wp                 # flattened padded plane (lane dim)
    L = H * Wp - 2                 # contiguous output band in the padded frame
    band = Wp + 1                  # band start = padded-frame index of (y=0,x=0)
    K = 9 * C + 1                  # im2col rows + 1 bias/mask row
    taps = tuple(dy * Wp + dx for dy in range(3) for dx in range(3))

    def kernel(x_ref, w1_ref, w2_ref, mask_ref, o_ref, pt_ref, hpad_ref):
        # x_ref   : (1, C, Hp*Wp)  zero-padded input image (lane-dense)
        # w*_ref  : (C, 9*C+1)     weight rows ordered (dy, dx, ci) | bias col
        # mask_ref: (1, L)         1.0 on real pixels, 0.0 on pad-column slots
        # pt_ref  : (9*C+1, L)     im2col patches + mask row (shared by convs)
        # hpad_ref: (C, Hp*Wp)     zero-padded conv1 activation (conv2 input)
        x = x_ref[0]
        mask = mask_ref[...]

        # bias/mask row shared by both convs (patch rows are rewritten per conv)
        pt_ref[9 * C:K, :] = mask

        # ---- conv1: 9 constant lane shifts -> one (C,K)@(K,L) MXU matmul
        for k, s in enumerate(taps):
            pt_ref[k * C:(k + 1) * C, :] = x[:, s:s + L]
        h1 = jnp.dot(w1_ref[...], pt_ref[...],
                     preferred_element_type=jnp.float32)
        h1 = jnp.maximum(h1, 0.0) * mask      # relu + re-zero pad columns

        # ---- conv2 input: zero only the two border strips (interior band is
        #      fully overwritten; pad columns are already zero via the mask)
        strip = jnp.zeros((C, Wp + 1), jnp.float32)
        hpad_ref[:, 0:Wp + 1] = strip
        hpad_ref[:, band + L:HpWp] = strip
        hpad_ref[:, band:band + L] = h1

        # ---- conv2: same im2col + single matmul (bias folded via mask row)
        for k, s in enumerate(taps):
            pt_ref[k * C:(k + 1) * C, :] = hpad_ref[:, s:s + L]
        h2 = jnp.dot(w2_ref[...], pt_ref[...],
                     preferred_element_type=jnp.float32)

        # ---- identity residual + relu, one dense lane-offset-0 band store
        res = x[:, band:band + L]
        o_ref[0] = jnp.maximum(h2 + res, 0.0).astype(o_ref.dtype)

    # ---- wrapper-side data prep (no NCHW<->NHWC transposes) ----
    xp = jnp.pad(x_nchw, ((0, 0), (0, 0), (1, 1), (1, 1))).reshape(N, C, HpWp)
    w1m = jnp.transpose(w1, (0, 2, 3, 1)).reshape(C, 9 * C)   # (co, dy, dx, ci)
    w2m = jnp.transpose(w2, (0, 2, 3, 1)).reshape(C, 9 * C)
    w1a = jnp.concatenate([w1m, b1.reshape(C, 1)], axis=1).astype(jnp.float32)
    w2a = jnp.concatenate([w2m, b2.reshape(C, 1)], axis=1).astype(jnp.float32)
    col = (jnp.arange(L) + band) % Wp
    mask = ((col >= 1) & (col <= W)).astype(jnp.float32).reshape(1, L)

    out_band = pl.pallas_call(
        kernel,
        out_shape=jax.ShapeDtypeStruct((N, C, L), jnp.float32),
        grid_spec=pltpu.PrefetchScalarGridSpec(
            num_scalar_prefetch=0,
            grid=(N,),
            in_specs=[
                pl.BlockSpec((1, C, HpWp), lambda n: (n, 0, 0)),
                pl.BlockSpec((C, K), lambda n: (0, 0)),
                pl.BlockSpec((C, K), lambda n: (0, 0)),
                pl.BlockSpec((1, L), lambda n: (0, 0)),
            ],
            out_specs=pl.BlockSpec((1, C, L), lambda n: (n, 0, 0)),
            scratch_shapes=[
                pltpu.VMEM((K, L), jnp.float32),     # im2col patches + mask row
                pltpu.VMEM((C, HpWp), jnp.float32),  # zero-padded conv1 act
            ],
        ),
        compiler_params=pltpu.CompilerParams(
            dimension_semantics=("parallel",)),
    )(xp, w1a, w2a, mask)

    # recover NCHW: band index j = y*Wp + x  ->  pad to H*Wp, reshape, drop pad cols
    out = jnp.pad(out_band, ((0, 0), (0, 0), (0, H * Wp - L)))
    return out.reshape(N, C, H, Wp)[:, :, :, :W]


def residual_block_ref(x, w1, b1, w2, b2):
    """Plain-JAX reference (NCHW), mirrors the PyTorch forward."""
    dn = ("NCHW", "OIHW", "NCHW")
    h = jax.lax.conv_general_dilated(x, w1, (1, 1), ((1, 1), (1, 1)),
                                     dimension_numbers=dn)
    h = jnp.maximum(h + b1[None, :, None, None], 0.0)
    h = jax.lax.conv_general_dilated(h, w2, (1, 1), ((1, 1), (1, 1)),
                                     dimension_numbers=dn)
    h = h + b2[None, :, None, None]
    return jnp.maximum(x + h, 0.0)


if __name__ == "__main__":
    N, C, H, W = 2, 4, 16, 16   # in_dim == out_dim == 4

    key = jax.random.PRNGKey(0)
    kx, k1, k2, kb1, kb2 = jax.random.split(key, 5)

    x = jax.random.normal(kx, (N, C, H, W), dtype=jnp.float32)

    # Deterministic kaiming-style init (fan_in = C * 3 * 3)
    std = (2.0 / (C * 9)) ** 0.5
    w1 = std * jax.random.normal(k1, (C, C, 3, 3), dtype=jnp.float32)
    w2 = std * jax.random.normal(k2, (C, C, 3, 3), dtype=jnp.float32)
    b1 = 0.1 * jax.random.normal(kb1, (C,), dtype=jnp.float32)
    b2 = 0.1 * jax.random.normal(kb2, (C,), dtype=jnp.float32)

    out = residual_block_pallas(x, w1, b1, w2, b2)
    out = jax.block_until_ready(out)

    ref = residual_block_ref(x, w1, b1, w2, b2)
    assert out.shape == (N, C, H, W)
    assert jnp.allclose(out, ref, rtol=1e-4, atol=1e-4), float(
        jnp.max(jnp.abs(out - ref)))

    print("KERNEL_OK")
</pallas_src>

<mosaic_0001>
module attributes {stable_mosaic.version = 11 : i64} {
  func.func @kernel(%arg0: i32, %arg1: memref<1x4x324xf32, #tpu.memory_space<vmem>>, %arg2: memref<4x37xf32, #tpu.memory_space<vmem>>, %arg3: memref<4x37xf32, #tpu.memory_space<vmem>>, %arg4: memref<1x286xf32, #tpu.memory_space<vmem>>, %arg5: memref<1x4x286xf32, #tpu.memory_space<vmem>>, %arg6: memref<37x286xf32, #tpu.memory_space<vmem>>, %arg7: memref<4x324xf32, #tpu.memory_space<vmem>>) attributes {dimension_semantics = [#tpu.dimension_semantics<parallel>], iteration_bounds = array<i64: 2>, scalar_prefetch = 0 : i64, scratch_operands = 2 : i64, tpu.core_type = #tpu.core_type<tc>, window_params = [{transform_indices = @transform_0, window_bounds = array<i64: 1, 4, 324>}, {pipeline_mode = #tpu.pipeline_mode<synchronous>, transform_indices = @transform_1, window_bounds = array<i64: 4, 37>}, {pipeline_mode = #tpu.pipeline_mode<synchronous>, transform_indices = @transform_2, window_bounds = array<i64: 4, 37>}, {pipeline_mode = #tpu.pipeline_mode<synchronous>, transform_indices = @transform_3, window_bounds = array<i64: 1, 286>}, {transform_indices = @transform_4, window_bounds = array<i64: 1, 4, 286>}]} {
    %c0 = arith.constant 0 : index
    %c0_0 = arith.constant 0 : index
    %c0_1 = arith.constant 0 : index
    %0 = vector.load %arg1[%c0, %c0_0, %c0_1] : memref<1x4x324xf32, #tpu.memory_space<vmem>>, vector<1x4x324xf32>
    %1 = vector.shape_cast %0 : vector<1x4x324xf32> to vector<4x324xf32>
    %c0_2 = arith.constant 0 : index
    %c0_3 = arith.constant 0 : index
    %2 = vector.load %arg4[%c0_2, %c0_3] : memref<1x286xf32, #tpu.memory_space<vmem>>, vector<1x286xf32>
    %c36 = arith.constant 36 : index
    %c0_4 = arith.constant 0 : index
    %3 = vector.load %arg6[%c36, %c0_4] : memref<37x286xf32, #tpu.memory_space<vmem>>, vector<1x286xf32>
    tpu.vector_store %arg6[%c36, %c0_4], %2 {strides = array<i32>} : memref<37x286xf32, #tpu.memory_space<vmem>>, vector<1x286xf32>,
    %4 = vector.extract_strided_slice %1 {offsets = [0, 0], sizes = [4, 286], strides = [1, 1]} : vector<4x324xf32> to vector<4x286xf32>
    %c0_5 = arith.constant 0 : index
    %c0_6 = arith.constant 0 : index
    %5 = vector.load %arg6[%c0_5, %c0_6] : memref<37x286xf32, #tpu.memory_space<vmem>>, vector<4x286xf32>
    tpu.vector_store %arg6[%c0_5, %c0_6], %4 {strides = array<i32>} : memref<37x286xf32, #tpu.memory_space<vmem>>, vector<4x286xf32>,
    %6 = vector.extract_strided_slice %1 {offsets = [0, 1], sizes = [4, 286], strides = [1, 1]} : vector<4x324xf32> to vector<4x286xf32>
    %c4 = arith.constant 4 : index
    %c0_7 = arith.constant 0 : index
    %7 = vector.load %arg6[%c4, %c0_7] : memref<37x286xf32, #tpu.memory_space<vmem>>, vector<4x286xf32>
    tpu.vector_store %arg6[%c4, %c0_7], %6 {strides = array<i32>} : memref<37x286xf32, #tpu.memory_space<vmem>>, vector<4x286xf32>,
    %8 = vector.extract_strided_slice %1 {offsets = [0, 2], sizes = [4, 286], strides = [1, 1]} : vector<4x324xf32> to vector<4x286xf32>
    %c8 = arith.constant 8 : index
    %c0_8 = arith.constant 0 : index
    %9 = vector.load %arg6[%c8, %c0_8] : memref<37x286xf32, #tpu.memory_space<vmem>>, vector<4x286xf32>
    tpu.vector_store %arg6[%c8, %c0_8], %8 {strides = array<i32>} : memref<37x286xf32, #tpu.memory_space<vmem>>, vector<4x286xf32>,
    %10 = vector.extract_strided_slice %1 {offsets = [0, 18], sizes = [4, 286], strides = [1, 1]} : vector<4x324xf32> to vector<4x286xf32>
    %c12 = arith.constant 12 : index
    %c0_9 = arith.constant 0 : index
    %11 = vector.load %arg6[%c12, %c0_9] : memref<37x286xf32, #tpu.memory_space<vmem>>, vector<4x286xf32>
    tpu.vector_store %arg6[%c12, %c0_9], %10 {strides = array<i32>} : memref<37x286xf32, #tpu.memory_space<vmem>>, vector<4x286xf32>,
    %12 = vector.extract_strided_slice %1 {offsets = [0, 19], sizes = [4, 286], strides = [1, 1]} : vector<4x324xf32> to vector<4x286xf32>
    %c16 = arith.constant 16 : index
    %c0_10 = arith.constant 0 : index
    %13 = vector.load %arg6[%c16, %c0_10] : memref<37x286xf32, #tpu.memory_space<vmem>>, vector<4x286xf32>
    tpu.vector_store %arg6[%c16, %c0_10], %12 {strides = array<i32>} : memref<37x286xf32, #tpu.memory_space<vmem>>, vector<4x286xf32>,
    %14 = vector.extract_strided_slice %1 {offsets = [0, 20], sizes = [4, 286], strides = [1, 1]} : vector<4x324xf32> to vector<4x286xf32>
    %c20 = arith.constant 20 : index
    %c0_11 = arith.constant 0 : index
    %15 = vector.load %arg6[%c20, %c0_11] : memref<37x286xf32, #tpu.memory_space<vmem>>, vector<4x286xf32>
    tpu.vector_store %arg6[%c20, %c0_11], %14 {strides = array<i32>} : memref<37x286xf32, #tpu.memory_space<vmem>>, vector<4x286xf32>,
    %16 = vector.extract_strided_slice %1 {offsets = [0, 36], sizes = [4, 286], strides = [1, 1]} : vector<4x324xf32> to vector<4x286xf32>
    %c24 = arith.constant 24 : index
    %c0_12 = arith.constant 0 : index
    %17 = vector.load %arg6[%c24, %c0_12] : memref<37x286xf32, #tpu.memory_space<vmem>>, vector<4x286xf32>
    tpu.vector_store %arg6[%c24, %c0_12], %16 {strides = array<i32>} : memref<37x286xf32, #tpu.memory_space<vmem>>, vector<4x286xf32>,
    %18 = vector.extract_strided_slice %1 {offsets = [0, 37], sizes = [4, 286], strides = [1, 1]} : vector<4x324xf32> to vector<4x286xf32>
    %c28 = arith.constant 28 : index
    %c0_13 = arith.constant 0 : index
    %19 = vector.load %arg6[%c28, %c0_13] : memref<37x286xf32, #tpu.memory_space<vmem>>, vector<4x286xf32>
    tpu.vector_store %arg6[%c28, %c0_13], %18 {strides = array<i32>} : memref<37x286xf32, #tpu.memory_space<vmem>>, vector<4x286xf32>,
    %20 = vector.extract_strided_slice %1 {offsets = [0, 38], sizes = [4, 286], strides = [1, 1]} : vector<4x324xf32> to vector<4x286xf32>
    %c32 = arith.constant 32 : index
    %c0_14 = arith.constant 0 : index
    %21 = vector.load %arg6[%c32, %c0_14] : memref<37x286xf32, #tpu.memory_space<vmem>>, vector<4x286xf32>
    tpu.vector_store %arg6[%c32, %c0_14], %20 {strides = array<i32>} : memref<37x286xf32, #tpu.memory_space<vmem>>, vector<4x286xf32>,
    %c0_15 = arith.constant 0 : index
    %c0_16 = arith.constant 0 : index
    %22 = vector.load %arg2[%c0_15, %c0_16] : memref<4x37xf32, #tpu.memory_space<vmem>>, vector<4x37xf32>
    %c0_17 = arith.constant 0 : index
    %c0_18 = arith.constant 0 : index
    %23 = vector.load %arg6[%c0_17, %c0_18] : memref<37x286xf32, #tpu.memory_space<vmem>>, vector<37x286xf32>
    %cst = arith.constant dense<0.000000e+00> : vector<4x286xf32>
    %24 = tpu.matmul %22, %23, %cst {dimension_numbers = #tpu.dot_dimension_numbers<[1], [0], [0], [1], [0, 0, 1, 1], [], []>} : vector<4x37xf32>, vector<37x286xf32>, vector<4x286xf32> -> vector<4x286xf32>
    %cst_19 = arith.constant 0.000000e+00 : f32
    %25 = vector.broadcast %cst_19 : f32 to vector<4x286xf32>
    %26 = arith.maximumf %24, %25 : vector<4x286xf32>
    %27 = vector.broadcast %2 : vector<1x286xf32> to vector<4x286xf32>
    %28 = arith.mulf %26, %27 : vector<4x286xf32>
    %cst_20 = arith.constant 0.000000e+00 : f32
    %29 = vector.broadcast %cst_20 : f32 to vector<4x19xf32>
    %c0_21 = arith.constant 0 : index
    %c0_22 = arith.constant 0 : index
    %30 = vector.load %arg7[%c0_21, %c0_22] : memref<4x324xf32, #tpu.memory_space<vmem>>, vector<4x19xf32>
    tpu.vector_store %arg7[%c0_21, %c0_22], %29 {strides = array<i32>} : memref<4x324xf32, #tpu.memory_space<vmem>>, vector<4x19xf32>,
    %c0_23 = arith.constant 0 : index
    %c305 = arith.constant 305 : index
    %31 = vector.load %arg7[%c0_23, %c305] : memref<4x324xf32, #tpu.memory_space<vmem>>, vector<4x19xf32>
    tpu.vector_store %arg7[%c0_23, %c305], %29 {strides = array<i32>} : memref<4x324xf32, #tpu.memory_space<vmem>>, vector<4x19xf32>,
    %c0_24 = arith.constant 0 : index
    %c19 = arith.constant 19 : index
    %32 = vector.load %arg7[%c0_24, %c19] : memref<4x324xf32, #tpu.memory_space<vmem>>, vector<4x286xf32>
    tpu.vector_store %arg7[%c0_24, %c19], %28 {strides = array<i32>} : memref<4x324xf32, #tpu.memory_space<vmem>>, vector<4x286xf32>,
    %c0_25 = arith.constant 0 : index
    %c0_26 = arith.constant 0 : index
    %33 = vector.load %arg7[%c0_25, %c0_26] : memref<4x324xf32, #tpu.memory_space<vmem>>, vector<4x286xf32>
    %c0_27 = arith.constant 0 : index
    %c0_28 = arith.constant 0 : index
    %34 = vector.load %arg6[%c0_27, %c0_28] : memref<37x286xf32, #tpu.memory_space<vmem>>, vector<4x286xf32>
    tpu.vector_store %arg6[%c0_27, %c0_28], %33 {strides = array<i32>} : memref<37x286xf32, #tpu.memory_space<vmem>>, vector<4x286xf32>,
    %c0_29 = arith.constant 0 : index
    %c1 = arith.constant 1 : index
    %35 = vector.load %arg7[%c0_29, %c1] : memref<4x324xf32, #tpu.memory_space<vmem>>, vector<4x286xf32>
    %c4_30 = arith.constant 4 : index
    %c0_31 = arith.constant 0 : index
    %36 = vector.load %arg6[%c4_30, %c0_31] : memref<37x286xf32, #tpu.memory_space<vmem>>, vector<4x286xf32>
    tpu.vector_store %arg6[%c4_30, %c0_31], %35 {strides = array<i32>} : memref<37x286xf32, #tpu.memory_space<vmem>>, vector<4x286xf32>,
    %c0_32 = arith.constant 0 : index
    %c2 = arith.constant 2 : index
    %37 = vector.load %arg7[%c0_32, %c2] : memref<4x324xf32, #tpu.memory_space<vmem>>, vector<4x286xf32>
    %c8_33 = arith.constant 8 : index
    %c0_34 = arith.constant 0 : index
    %38 = vector.load %arg6[%c8_33, %c0_34] : memref<37x286xf32, #tpu.memory_space<vmem>>, vector<4x286xf32>
    tpu.vector_store %arg6[%c8_33, %c0_34], %37 {strides = array<i32>} : memref<37x286xf32, #tpu.memory_space<vmem>>, vector<4x286xf32>,
    %c0_35 = arith.constant 0 : index
    %c18 = arith.constant 18 : index
    %39 = vector.load %arg7[%c0_35, %c18] : memref<4x324xf32, #tpu.memory_space<vmem>>, vector<4x286xf32>
    %c12_36 = arith.constant 12 : index
    %c0_37 = arith.constant 0 : index
    %40 = vector.load %arg6[%c12_36, %c0_37] : memref<37x286xf32, #tpu.memory_space<vmem>>, vector<4x286xf32>
    tpu.vector_store %arg6[%c12_36, %c0_37], %39 {strides = array<i32>} : memref<37x286xf32, #tpu.memory_space<vmem>>, vector<4x286xf32>,
    %c0_38 = arith.constant 0 : index
    %c19_39 = arith.constant 19 : index
    %41 = vector.load %arg7[%c0_38, %c19_39] : memref<4x324xf32, #tpu.memory_space<vmem>>, vector<4x286xf32>
    %c16_40 = arith.constant 16 : index
    %c0_41 = arith.constant 0 : index
    %42 = vector.load %arg6[%c16_40, %c0_41] : memref<37x286xf32, #tpu.memory_space<vmem>>, vector<4x286xf32>
    tpu.vector_store %arg6[%c16_40, %c0_41], %41 {strides = array<i32>} : memref<37x286xf32, #tpu.memory_space<vmem>>, vector<4x286xf32>,
    %c0_42 = arith.constant 0 : index
    %c20_43 = arith.constant 20 : index
    %43 = vector.load %arg7[%c0_42, %c20_43] : memref<4x324xf32, #tpu.memory_space<vmem>>, vector<4x286xf32>
    %c20_44 = arith.constant 20 : index
    %c0_45 = arith.constant 0 : index
    %44 = vector.load %arg6[%c20_44, %c0_45] : memref<37x286xf32, #tpu.memory_space<vmem>>, vector<4x286xf32>
    tpu.vector_store %arg6[%c20_44, %c0_45], %43 {strides = array<i32>} : memref<37x286xf32, #tpu.memory_space<vmem>>, vector<4x286xf32>,
    %c0_46 = arith.constant 0 : index
    %c36_47 = arith.constant 36 : index
    %45 = vector.load %arg7[%c0_46, %c36_47] : memref<4x324xf32, #tpu.memory_space<vmem>>, vector<4x286xf32>
    %c24_48 = arith.constant 24 : index
    %c0_49 = arith.constant 0 : index
    %46 = vector.load %arg6[%c24_48, %c0_49] : memref<37x286xf32, #tpu.memory_space<vmem>>, vector<4x286xf32>
    tpu.vector_store %arg6[%c24_48, %c0_49], %45 {strides = array<i32>} : memref<37x286xf32, #tpu.memory_space<vmem>>, vector<4x286xf32>,
    %c0_50 = arith.constant 0 : index
    %c37 = arith.constant 37 : index
    %47 = vector.load %arg7[%c0_50, %c37] : memref<4x324xf32, #tpu.memory_space<vmem>>, vector<4x286xf32>
    %c28_51 = arith.constant 28 : index
    %c0_52 = arith.constant 0 : index
    %48 = vector.load %arg6[%c28_51, %c0_52] : memref<37x286xf32, #tpu.memory_space<vmem>>, vector<4x286xf32>
    tpu.vector_store %arg6[%c28_51, %c0_52], %47 {strides = array<i32>} : memref<37x286xf32, #tpu.memory_space<vmem>>, vector<4x286xf32>,
    %c0_53 = arith.constant 0 : index
    %c38 = arith.constant 38 : index
    %49 = vector.load %arg7[%c0_53, %c38] : memref<4x324xf32, #tpu.memory_space<vmem>>, vector<4x286xf32>
    %c32_54 = arith.constant 32 : index
    %c0_55 = arith.constant 0 : index
    %50 = vector.load %arg6[%c32_54, %c0_55] : memref<37x286xf32, #tpu.memory_space<vmem>>, vector<4x286xf32>
    tpu.vector_store %arg6[%c32_54, %c0_55], %49 {strides = array<i32>} : memref<37x286xf32, #tpu.memory_space<vmem>>, vector<4x286xf32>,
    %c0_56 = arith.constant 0 : index
    %c0_57 = arith.constant 0 : index
    %51 = vector.load %arg3[%c0_56, %c0_57] : memref<4x37xf32, #tpu.memory_space<vmem>>, vector<4x37xf32>
    %c0_58 = arith.constant 0 : index
    %c0_59 = arith.constant 0 : index
    %52 = vector.load %arg6[%c0_58, %c0_59] : memref<37x286xf32, #tpu.memory_space<vmem>>, vector<37x286xf32>
    %cst_60 = arith.constant dense<0.000000e+00> : vector<4x286xf32>
    %53 = tpu.matmul %51, %52, %cst_60 {dimension_numbers = #tpu.dot_dimension_numbers<[1], [0], [0], [1], [0, 0, 1, 1], [], []>} : vector<4x37xf32>, vector<37x286xf32>, vector<4x286xf32> -> vector<4x286xf32>
    %54 = vector.extract_strided_slice %1 {offsets = [0, 19], sizes = [4, 286], strides = [1, 1]} : vector<4x324xf32> to vector<4x286xf32>
    %55 = arith.addf %53, %54 : vector<4x286xf32>
    %cst_61 = arith.constant 0.000000e+00 : f32
    %56 = vector.broadcast %cst_61 : f32 to vector<4x286xf32>
    %57 = arith.maximumf %55, %56 : vector<4x286xf32>
    %c0_62 = arith.constant 0 : index
    %c0_63 = arith.constant 0 : index
    %c0_64 = arith.constant 0 : index
    %58 = vector.load %arg5[%c0_62, %c0_63, %c0_64] : memref<1x4x286xf32, #tpu.memory_space<vmem>>, vector<1x4x286xf32>
    %59 = vector.shape_cast %58 : vector<1x4x286xf32> to vector<4x286xf32>
    %60 = vector.shape_cast %57 : vector<4x286xf32> to vector<1x4x286xf32>
    tpu.vector_store %arg5[%c0_62, %c0_63, %c0_64], %60 {strides = array<i32>} : memref<1x4x286xf32, #tpu.memory_space<vmem>>, vector<1x4x286xf32>,
    return
  }
  func.func @transform_0(%arg0: i32) -> (i32, i32, i32) {
    %c0_i32 = arith.constant 0 : i32
    %c0_i32_0 = arith.constant 0 : i32
    %c0_i32_1 = arith.constant 0 : i32
    return %arg0, %c0_i32, %c0_i32_0 : i32, i32, i32
  }
  func.func @transform_1(%arg0: i32) -> (i32, i32) {
    %c0_i32 = arith.constant 0 : i32
    %c0_i32_0 = arith.constant 0 : i32
    %c0_i32_1 = arith.constant 0 : i32
    return %c0_i32, %c0_i32_0 : i32, i32
  }
  func.func @transform_2(%arg0: i32) -> (i32, i32) {
    %c0_i32 = arith.constant 0 : i32
    %c0_i32_0 = arith.constant 0 : i32
    %c0_i32_1 = arith.constant 0 : i32
    return %c0_i32, %c0_i32_0 : i32, i32
  }
  func.func @transform_3(%arg0: i32) -> (i32, i32) {
    %c0_i32 = arith.constant 0 : i32
    %c0_i32_0 = arith.constant 0 : i32
    %c0_i32_1 = arith.constant 0 : i32
    return %c0_i32, %c0_i32_0 : i32, i32
  }
  func.func @transform_4(%arg0: i32) -> (i32, i32, i32) {
    %c0_i32 = arith.constant 0 : i32
    %c0_i32_0 = arith.constant 0 : i32
    %c0_i32_1 = arith.constant 0 : i32
    return %arg0, %c0_i32, %c0_i32_0 : i32, i32, i32
  }
}

</mosaic_0001>

<bundles_post_ra>
// kernel: tpu_custom_call.1
= control target key start
LH: loop header
LB: loop body
LE: loop exit
PB: predicated region body
PF: predicated region fallthrough
CT: control target
= control target key end

     0   :  { %9 = vsyncpa [#allocation5], 0  ;;  %s1713_s0 = inlined_call_operand.hbm [shape: f32[2,4,324], index: 0, kind: input, shape index: {}]   ;;  %s1714_s1 = inlined_call_operand.hbm [shape: f32[4,37], index: 1, kind: input, shape index: {}]   ;;  %s1715_s2 = inlined_call_operand.vmem [shape: f32[4,37], index: 2, kind: input, shape index: {}]   ;;  %s1716_s3 = inlined_call_operand.vmem [shape: f32[1,286], index: 3, kind: input, shape index: {}]   ;;  %s1717_s4 = inlined_call_operand.hbm [shape: f32[2,4,286], index: 4, kind: output, shape index: {}]  }
   0x1   :  { %11 = vsyncpa [#allocation5 + $0x1], 0 }
   0x2   :  { %12 = vsyncpa [#allocation8], 0 }
   0x3   :  { %13 = vsyncpa [#allocation6], 0 }
   0x4   :  { %15 = vsyncpa [#allocation6 + $0x1], 0  ;;  %s1358_s15 = smov 0   ;;  %s1360_s16 = smov 0  }
   0x5   :  { %s1362_s17 = smov 0   ;;  %s1364_s18 = smov 0  }
   0x6 LB: > { %s1379_s19 = sadd.s32 4294967295, %s1316_s18   ;;  %s1022_s20 = sadd.s32 4294967294, %s1316_s18   ;;  %s1316_s18 = sphi %s1364_s18, %s1744_s18   ;;  %s1312_s17 = sphi %s1362_s17, %s1743_s17   ;;  %s1308_s16 = sphi %s1360_s16, %s1742_s16   ;;  %s1304_s15 = sphi %s1358_s15, %s1741_s15  }
   0x7   : > { %p41_p0 = scmp.ne.s32.totalorder %s1308_s16, %s1304_s15  ;;  %p1718_p1 = scmp.eq.s32.totalorder %s1379_s19, 0 }
   0x8   : > { %p134_p3 = scmp.eq.s32.totalorder %s1022_s20, 1  ;;  %p1023_p5 = scmp.ge.s32.totalorder %s1316_s18, 1 }
   0x9   : > { %p1388_p4 = por %p1718_p1, %p41_p0  ;;  %p141_p7 = scmp.lt.s32.totalorder %s1316_s18, 3 }
   0xa   : > { %p1393_p6 = por %p134_p3, %p41_p0  ;;  %s1318_s24 = smov [#allocation7]  }
   0xb   : > { %s1722_s21 = scalar_select %p1388_p4, 1, 0 }
   0xc   : > { %s1723_s22 = scalar_select %p1393_p6, 1, 0 }
   0xd   : > { %p1398_p8 = pnand %p1023_p5, %p141_p7  ;;  %s154_s25 = sshll.u32 %s1318_s24, 4  ;;  %s155_s25 = int_to_ptr.vmem [resolvable:$true] %s154_s25 }
   0xe   : > { %s1406_s26 = sadd.s32 1, %s1316_s18   ;;  %s28_s30 = sadd.s32 1, %s1312_s17 }
   0xf   : > { %s1724_s23 = scalar_select %p1398_p8, 1, 0 }
  0x10   : > { %p1120_p10 = pneg %p1398_p8  ;;  %s25_s28 = ssub.s32 %s1316_s18, %s1406_s26 }
  0x11   : > { %p1416_p12 = scmp.eq.s32.totalorder %s25_s28, 0  ;;  %s1188_s7 = scalar_lea.hbm %s1714_s1, 64 }
  0x12   : > { %p1410_p11 = pnand %p1120_p10, %p1718_p1  ;;  %p1189_p0 = scmp.ne.s32.totalorder %s1714_s1, %s1188_s7 }
  0x13   : > { %s1726_s29 = scalar_select %p1416_p12, 1, 0 }
  0x14   : > { %p1190_p3 = pneg %p1410_p11  ;;  %p1195_p10 = scmp.lt.u32.totalorder %s1188_s7, %s1714_s1 }
  0x16   : > { %p1191_p5 = pnand %p1190_p3, %p1189_p0 }
  0x18   : > { %p1192_p7 = pneg %p1191_p5 }
  0x1a   : > { %p1197_p9 = pnand %p1195_p10, %p1192_p7 }
  0x1c   : > { %1200 = shalt.err (!%p1197_p9)
}
  0x1d   : > { %s1201_s12 = scalar_lea.vmem %s155_s25, 64  ;;  %p1209_p6 = scmp.lt.s32.totalorder %s155_s25, %s155_s25 }
  0x1e   : > { %p1202_p1 = scmp.ne.s32.totalorder %s155_s25, %s1201_s12  ;;  %p1210_p4 = scmp.lt.s32.totalorder %s1201_s12, %s1201_s12 }
  0x20   : > { %p1204_p2 = pnand %p1202_p1, %p1190_p3  ;;  %p1211_p8 = por %p1210_p4, %p1209_p6 }
  0x22   : > { %p1205_p13 = pneg %p1204_p2 }
  0x24   : > { %p1212_p12 = pnand %p1211_p8, %p1205_p13 }
  0x26   : > { %1215 = shalt.err (!%p1212_p12)
}
  0x27   : > { %1123 = dma.hbm_to_vmem [thread:$0]  (!%p1410_p11), %s1714_s1, 64, %s155_s25, [#allocation8]  }
  0x28   : > { %p1727_p1 = scmp.ne.s32.totalorder %s1726_s29, 0  ;;  %p36_p2 = scmp.eq.s32.totalorder %s1316_s18, 0 }
  0x29   : > { %p1728_p4 = scmp.ne.s32.totalorder %s1312_s17, %s1308_s16  ;;  %p1729_p6 = scmp.eq.s32.totalorder %s1379_s19, 1 }
  0x2a   : > { %s1442_s20 = scalar_select %p1727_p1, %s1312_s17, %s28_s30  }
  0x2b   : > { %p1450_p8 = por %p1729_p6, %p1728_p4  ;;  %p1133_p9 = scmp.lt.s32.totalorder %s1316_s18, 2 }
  0x2c   : > { %s171_s27 = sand.u32 1, %s1312_s17   ;;  %p1731_p12 = pmov %p1728_p4 }
  0x2d   : > { %s1108_s28 = smul.u32 12, %s171_s27  ;;  %s172_s9 = scalar_lea.sflag [#allocation5], %s171_s27 }
  0x2e   : > { %p37_p13 = por %p36_p2, %p1731_p12  ;;  %s1109_s5 = smul.u32 192, %s1316_s18 }
  0x2f   : > { %s175_s7 = scalar_lea.vmem [#allocation4], %s1108_s28  ;;  %s1221_s13 = scalar_lea.hbm %s1713_s0, 384 }
  0x30   : > { %p1460_p0 = pnand %p1133_p9, %p37_p13  ;;  %s1467_s30 = scalar_lea.hbm %s1713_s0, %s1109_s5 }
  0x31   : > { %s183_s8 = sshll.u32 %s175_s7, 4  ;;  %s1216_s10 = scalar_lea.hbm %s1467_s30, 192  ;;  %s1469_s8 = int_to_ptr.vmem [resolvable:$true] %s183_s8 }
  0x32   : > { %p1217_p11 = scmp.ne.s32.totalorder %s1467_s30, %s1216_s10  ;;  %p1218_p3 = pneg %p1460_p0 }
  0x33   : > { %p1222_p10 = scmp.lt.u32.totalorder %s1467_s30, %s1713_s0  ;;  %p1223_p1 = scmp.lt.u32.totalorder %s1221_s13, %s1216_s10 }
  0x34   : > { %p1219_p5 = pnand %p1218_p3, %p1217_p11  ;;  %p1225_p4 = scmp.lt.u32.totalorder %s1216_s10, %s1467_s30 }
  0x35   : > { %p1224_p2 = por %p1223_p1, %p1222_p10 }
  0x36   : > { %p1220_p7 = pneg %p1219_p5 }
  0x37   : > { %p1226_p6 = por %p1225_p4, %p1224_p2 }
  0x39   : > { %p1227_p9 = pnand %p1226_p6, %p1220_p7 }
  0x3b   : > { %1230 = shalt.err (!%p1227_p9)
}
  0x3c   : > { %s1231_s27 = scalar_lea.vmem %s1469_s8, 192  ;;  %s1319_s28 = smov [#allocation4]  }
  0x3d   : > { %p1232_p12 = scmp.ne.s32.totalorder %s1469_s8, %s1231_s27  ;;  %s1236_s25 = sshll.u32 %s1319_s28, 4  ;;  %s1237_s25 = int_to_ptr.vmem [resolvable:$false] %s1236_s25 }
  0x3e   : > { %s1238_s29 = scalar_lea.vmem %s1237_s25, 384  ;;  %p1239_p5 = scmp.lt.s32.totalorder %s1469_s8, %s1237_s25 }
  0x3f   : > { %p1234_p13 = pnand %p1232_p12, %p1218_p3  ;;  %p1240_p10 = scmp.lt.s32.totalorder %s1238_s29, %s1231_s27 }
  0x41   : > { %p1235_p11 = pneg %p1234_p13  ;;  %p1241_p1 = por %p1240_p10, %p1239_p5 }
  0x43   : > { %p1242_p2 = pnand %p1241_p1, %p1235_p11 }
  0x45   : > { %1245 = shalt.err (!%p1242_p2)
}
  0x46   : > { %1127 = dma.hbm_to_vmem [thread:$0]  (!%p1460_p0), %s1467_s30, 192, %s1469_s8, %s172_s9  }
  0x47   : > { %p1733_p7 = scmp.ne.s32.totalorder %s1724_s23, 0 }
  0x48   : > { %s1499_s7 = sand.u32 (!%p1733_p7), 1, %s1308_s16   ;;  %p1734_p3 = scmp.ne.s32.totalorder (!%p1733_p7), %s1722_s21, 0 }
  0x49   : > { %192 = sbr.rel (%p1733_p7) target bundleno = 1005 (0x3ed), region = 36  ;;  %s195_s11 = scalar_lea.sflag (!%p1733_p7), [#allocation5], %s1499_s7 }
  0x4a   : > { %s1110_s10 = smul.u32 (!%p1733_p7), 12, %s1499_s7 }
  0x4c   : > { %s198_s12 = scalar_lea.vmem (!%p1733_p7), [#allocation4], %s1110_s10 }
  0x50   : > { %1291 = dma.done.wait (%p1734_p3), %s195_s11, 192  }
  0x51   : > { %1293 = vsyncadd (%p1734_p3), %s195_s11, 4294967104  ;;  %p1735_p0 = scmp.eq.s32.totalorder %s1379_s19, 0 }
  0x53   : > { %1295 = dma.done.wait (%p1735_p0), [#allocation8], 64   ;;  %p1736_p4 = pmov %p1735_p0 }
  0x54   : > { %v228_v0 = vld [vmem:[%s198_s12 + $0x8] sm:$0xf]  ;;  %vm243_vm0 = vcmask 240640   ;;  %v227_v1 = vld [vmem:[%s198_s12] sm:$0xff]  ;;  %s1320_s23 = smov 126   ;;  %s1321_s6 = smov 127   ;;  %v230_v6 = vlaneseq }
  0x55   : > { %1297 = vsyncadd (%p1736_p4), [#allocation8], 4294967232  ;;  %267 = vrot.lane.b32.xlu1 %v228_v0, %s1320_s23  ;;  %244 = vst.msk [vmem:[#allocation2 + $0x10] sm:$0xf] %vm243_vm0, %v228_v0  ;;  %249 = vrot.lane.b32.xlu0 %v227_v1, %s1321_s6  ;;  %v239_v2 = vcombine.high %v227_v1, %v227_v1  ;;  %s1322_s21 = smov 110   ;;  %v246_v3 = vcombine.low %v228_v0, %v228_v0  ;;  %v1323_v4 = vmov 0.0|0.0  }
  0x56   : > { %241 = vst [vmem:[#allocation2] sm:$0xf] %v227_v1  ;;  %1088 = vmatprep.subr.bf16.mxu1 %v1323_v4  ;;  %v245_v5 = vcombine.low %v227_v1, %v227_v1  ;;  %s1324_s30 = smov 109   ;;  %s1325_s8 = smov 108   ;;  %v1534_v7 = vld [vmem:[%s1716_s3] sm:$0x7] }
  0x57   : > { %242 = vst [vmem:[#allocation2 + $0x8] sm:$0xf] %v239_v2  ;;  %s1326_s9 = smov 92   ;;  %s1327_s13 = smov 91   ;;  %vm232_vm1 = vcmp.lt.s32.totalorder %v230_v6, 286  ;;  %v1328_v8 = vmov 0.0  }
  0x58   : > { %235 = vst.msk [vmem:[#allocation2 + $0x64] ss:$8 sm:$0x7] %vm232_vm1, %v1534_v7  ;;  %462 = vmatprep.mubr.f32.mxu0 %v1328_v8  ;;  %s1329_s27 = smov 90   ;;  %vm1330_vm2 = vmmov 0   ;;  %vm269_vm3 = vcmask 1031168  }
  0x59   : > { %280 = vrot.lane.b32.xlu0 %v227_v1, %s1322_s21  ;;  %265 = vrot.lane.b32.xlu1 %v239_v2, %s1320_s23  ;;  %vm253_vm4 = vcmask 1039360   ;;  %vm261_vm5 = vcmask 244740   ;;  %vm284_vm6 = vcmask 900096   ;;  %vm299_vm7 = vcmask 891904   ;;  %s1331_s28 = smov 19   ;;  %s226_s11 = scalar_lea.vmem [#allocation9], %s1110_s10 }
  0x5a   : > { %1064 = vmatprep.mubr.msk.f32.mxu1 %vm1330_vm2, %v1328_v8  ;;  %vm314_vm8 = vcmask 883712   ;;  %vm329_vm9 = vcmask 752640   ;;  %vm344_vm10 = vcmask 744448   ;;  %vm359_vm11 = vcmask 736256   ;;  %s1111_s12 = smul.u32 192, %s1379_s19  ;;  %s1332_s19 = smov [#allocation9]  }
  0x5b   : > { %vm388_vm12 = vcmask 1044480   ;;  %vm1721_vm13 = vcmask 302080   ;;  %vm561_vm14 = vcmask 150528   ;;  %vm563_vm15 = vcmask 552328  }
  0x5c   : > { %562 = vst.msk [vmem:[#allocation3] sm:$0xf] %vm561_vm14, %v1328_v8  ;;  %vm579_vm1 = vcmask 1043608   ;;  %vm574_vm14 = vcmask 154624  }
  0x5d   : > { %251 = vrot.lane.b32.xlu0 %v246_v3, %s1321_s6  ;;  %282 = vrot.lane.b32.xlu1 %v246_v3, %s1322_s21  ;;  %564 = vst.msk [vmem:[#allocation3 + $0x8] sm:$0xf] %vm563_vm15, %v1328_v8 }
  0x61   : > { %247 = vrot.lane.b32.xlu0 %v245_v5, %s1321_s6  ;;  %263 = vrot.lane.b32.xlu1 %v227_v1, %s1320_s23 }
  0x65   : > { %278 = vrot.lane.b32.xlu0 %v245_v5, %s1322_s21  ;;  %295 = vrot.lane.b32.xlu1 %v239_v2, %s1324_s30 }
  0x69   : > { %297 = vrot.lane.b32.xlu0 %v228_v0, %s1324_s30  ;;  %310 = vrot.lane.b32.xlu1 %v227_v1, %s1325_s8 }
  0x6d   : > { %312 = vrot.lane.b32.xlu0 %v246_v3, %s1325_s8  ;;  %325 = vrot.lane.b32.xlu1 %v239_v2, %s1326_s9 }
  0x71   : > { %327 = vrot.lane.b32.xlu0 %v228_v0, %s1326_s9  ;;  %340 = vrot.lane.b32.xlu1 %v227_v1, %s1327_s13 }
  0x75   : > { %342 = vrot.lane.b32.xlu0 %v246_v3, %s1327_s13  ;;  %293 = vrot.lane.b32.xlu1 %v227_v1, %s1324_s30 }
  0x79   : > { %308 = vrot.lane.b32.xlu0 %v245_v5, %s1325_s8  ;;  %323 = vrot.lane.b32.xlu1 %v227_v1, %s1326_s9 }
  0x7d   : > { %338 = vrot.lane.b32.xlu0 %v245_v5, %s1327_s13  ;;  %355 = vrot.lane.b32.xlu1 %v239_v2, %s1329_s27 }
  0x81   : > { %357 = vrot.lane.b32.xlu0 %v228_v0, %s1329_s27  ;;  %353 = vrot.lane.b32.xlu1 %v227_v1, %s1329_s27 }
  0xc7   : > { %v268_v9 = vpop.permute.xlu1 %267  ;;  %v250_v10 = vpop.permute.xlu0 %249 }
  0xc8   : > { %277 = vst.msk [vmem:[#allocation2 + $0x28] sm:$0xf] %vm243_vm0, %v268_v9 }
  0xcb   : > { %v281_v11 = vpop.permute.xlu0 %280  ;;  %v266_v12 = vpop.permute.xlu1 %265 }
  0xcc   : > { %v271_v13 = vsel %vm269_vm3, %v266_v12, %v268_v9  ;;  %v368_v9 = vld [vmem:[#allocation7] sm:$0xf] }
  0xcd   : > { %276 = vst [vmem:[#allocation2 + $0x20] sm:$0xf] %v271_v13 }
  0xcf   : > { %v252_v14 = vpop.permute.xlu0 %251  ;;  %v283_v15 = vpop.permute.xlu1 %282 }
  0xd0   : > { %v255_v16 = vsel %vm253_vm4, %v250_v10, %v252_v14  ;;  %262 = vst.msk [vmem:[#allocation2 + $0x10] sm:$0xf0] %vm261_vm5, %v252_v14  ;;  %v286_v17 = vsel %vm284_vm6, %v281_v11, %v283_v15  ;;  %292 = vst.msk [vmem:[#allocation2 + $0x28] sm:$0xf0] %vm261_vm5, %v283_v15 }
  0xd1   : > { %260 = vst [vmem:[#allocation2 + $0x8] sm:$0xf0] %v255_v16  ;;  %291 = vst [vmem:[#allocation2 + $0x20] sm:$0xf0] %v286_v17 }
  0xd3   : > { %v248_v18 = vpop.permute.xlu0 %247  ;;  %v264_v19 = vpop.permute.xlu1 %263 }
  0xd4   : > { %v254_v20 = vsel %vm253_vm4, %v248_v18, %v250_v10  ;;  %v270_v21 = vsel %vm269_vm3, %v264_v19, %v266_v12 }
  0xd5   : > { %259 = vst [vmem:[#allocation2] sm:$0xf0] %v254_v20  ;;  %275 = vst [vmem:[#allocation2 + $0x18] sm:$0xf] %v270_v21 }
  0xd7   : > { %v279_v22 = vpop.permute.xlu0 %278  ;;  %v296_v23 = vpop.permute.xlu1 %295  ;;  %v371_v24 = vld [vmem:[#allocation2 + $0x10] sm:$0xff]  ;;  %v374_v25 = vld [vmem:[#allocation2 + $0x28] sm:$0xff] }
  0xd8   : > { %v285_v26 = vsel %vm284_vm6, %v279_v22, %v281_v11  ;;  %v1089_v27 = vpack.c.bf16 %v374_v25, %v371_v24  ;;  %v370_v28 = vld [vmem:[#allocation2 + $0x8] sm:$0xff]  ;;  %v373_v29 = vld [vmem:[#allocation2 + $0x20] sm:$0xff]  ;;  %v544_v11 = vshrl.u32 %v230_v6, 7 }
  0xd9   : > { %290 = vst [vmem:[#allocation2 + $0x18] sm:$0xf0] %v285_v26  ;;  %v1080_v30 = vpack.c.bf16 %v373_v29, %v370_v28 }
  0xda   : > { %1090 = vmatpush3.bf16.msra.mxu1 %v1089_v27  ;;  %v553_v12 = vsub.s32 2, %v544_v11  ;;  %v545_v13 = vsub.s32 0, %v544_v11  ;;  %v549_v14 = vsub.s32 1, %v544_v11 }
  0xdb   : > { %v1558_v31 = vpop.permute.xlu0 %297  ;;  %v311_v32 = vpop.permute.xlu1 %310  ;;  %1081 = vmatprep.subr.bf16.mxu0 %v1080_v30  ;;  %1091 = vmatprep.subr.bf16.mxu1 %v1323_v4 }
  0xdc   : > { %v1563_v33 = vsel %vm299_vm7, %v296_v23, %v1558_v31  ;;  %307 = vst.msk [vmem:[#allocation2 + $0x40] sm:$0xf] %vm243_vm0, %v1558_v31  ;;  %v369_v37 = vld [vmem:[#allocation2] sm:$0xff]  ;;  %v554_v15 = vrot.slane %v1534_v7, %v553_v12  ;;  %v546_v19 = vrot.slane %v1534_v7, %v545_v13  ;;  %v550_v21 = vrot.slane %v1534_v7, %v549_v14 }
  0xdd   : > { %306 = vst [vmem:[#allocation2 + $0x38] sm:$0xf] %v1563_v33 }
  0xdf   : > { %v313_v34 = vpop.permute.xlu0 %312  ;;  %v326_v35 = vpop.permute.xlu1 %325 }
  0xe0   : > { %v316_v36 = vsel %vm314_vm8, %v311_v32, %v313_v34  ;;  %322 = vst.msk [vmem:[#allocation2 + $0x40] sm:$0xf0] %vm261_vm5, %v313_v34  ;;  %v372_v38 = vld [vmem:[#allocation2 + $0x18] sm:$0xff] }
  0xe1   : > { %321 = vst [vmem:[#allocation2 + $0x38] sm:$0xf0] %v316_v36  ;;  %v1082_v39 = vpack.c.bf16 %v372_v38, %v369_v37 }
  0xe3   : > { %v328_v40 = vpop.permute.xlu0 %327  ;;  %v341_v41 = vpop.permute.xlu1 %340  ;;  %1083 = vmatpush1.bf16.msra.mxu0 %v1082_v39 }
  0xe4   : > { %v331_v42 = vsel %vm329_vm9, %v326_v35, %v328_v40  ;;  %337 = vst.msk [vmem:[#allocation2 + $0x58] sm:$0xf] %vm243_vm0, %v328_v40 }
  0xe5   : > { %336 = vst [vmem:[#allocation2 + $0x50] sm:$0xf] %v331_v42 }
  0xe7   : > { %v343_v43 = vpop.permute.xlu0 %342  ;;  %v294_v44 = vpop.permute.xlu1 %293  ;;  %v377_v53 = vld [vmem:[#allocation2 + $0x40] sm:$0xff] }
  0xe8   : > { %v346_v45 = vsel %vm344_vm10, %v341_v41, %v343_v43  ;;  %352 = vst.msk [vmem:[#allocation2 + $0x58] sm:$0xf0] %vm261_vm5, %v343_v43  ;;  %v1575_v46 = vsel %vm299_vm7, %v294_v44, %v296_v23  ;;  %v376_v57 = vld [vmem:[#allocation2 + $0x38] sm:$0xff] }
  0xe9   : > { %351 = vst [vmem:[#allocation2 + $0x50] sm:$0xf0] %v346_v45  ;;  %305 = vst [vmem:[#allocation2 + $0x30] sm:$0xf] %v1575_v46 }
  0xeb   : > { %v309_v47 = vpop.permute.xlu0 %308  ;;  %v324_v48 = vpop.permute.xlu1 %323 }
  0xec   : > { %v315_v49 = vsel %vm314_vm8, %v309_v47, %v311_v32  ;;  %v330_v50 = vsel %vm329_vm9, %v324_v48, %v326_v35 }
  0xed   : > { %320 = vst [vmem:[#allocation2 + $0x30] sm:$0xf0] %v315_v49  ;;  %335 = vst [vmem:[#allocation2 + $0x48] sm:$0xf] %v330_v50 }
  0xef   : > { %v339_v51 = vpop.permute.xlu0 %338  ;;  %v356_v52 = vpop.permute.xlu1 %355  ;;  %v380_v54 = vld [vmem:[#allocation2 + $0x58] sm:$0xff] }
  0xf0   : > { %v345_v55 = vsel %vm344_vm10, %v339_v51, %v341_v41  ;;  %v1092_v56 = vpack.c.bf16 %v380_v54, %v377_v53  ;;  %v379_v58 = vld [vmem:[#allocation2 + $0x50] sm:$0xff] }
  0xf1   : > { %350 = vst [vmem:[#allocation2 + $0x48] sm:$0xf0] %v345_v55  ;;  %v1084_v59 = vpack.c.bf16 %v379_v58, %v376_v57 }
  0xf2   : > { %1093 = vmatpush3.bf16.msra.mxu1 %v1092_v56 }
  0xf3   : > { %v358_v60 = vpop.permute.xlu0 %357  ;;  %v354_v61 = vpop.permute.xlu1 %353  ;;  %1085 = vmatprep.subr.bf16.mxu0 %v1084_v59  ;;  %1062 = vmatprep.subr.mxu1 %v1328_v8 }
  0xf4   : > { %v361_v62 = vsel %vm359_vm11, %v356_v52, %v358_v60  ;;  %367 = vst.msk [vmem:[#allocation2 + $0x70] sm:$0xf] %vm243_vm0, %v358_v60  ;;  %v360_v63 = vsel %vm359_vm11, %v354_v61, %v356_v52  ;;  %v375_v0 = vld [vmem:[#allocation2 + $0x30] sm:$0xff] }
  0xf5   : > { %366 = vst [vmem:[#allocation2 + $0x68] sm:$0xf] %v361_v62  ;;  %365 = vst [vmem:[#allocation2 + $0x60] sm:$0xf] %v360_v63 }
  0xf8   : > { %v378_v1 = vld [vmem:[#allocation2 + $0x48] sm:$0xff] }
  0xf9   : > { %v1086_v2 = vpack.c.bf16 %v378_v1, %v375_v0 }
  0xfb   : > { %1087 = vmatpush1.bf16.msra.mxu0 %v1086_v2  ;;  %v383_v3 = vld [vmem:[#allocation2 + $0x70] sm:$0x1f] }
  0xfc   : > { %v382_v5 = vld [vmem:[#allocation2 + $0x68] sm:$0x1f]  ;;  %1063 = vmatpush3.msk.msra.mxu1 %vm388_vm12, %v383_v3  ;;  %v381_v10 = vld [vmem:[#allocation2 + $0x60] sm:$0x1f] }
  0xfd   : > { %1029 = vmatprep.subr.msk.mxu0 %vm388_vm12, %v382_v5  ;;  %1065 = vmatmul.mubr.msk.f32.vlgmr.msra.gmra.mrb[0].mxu1 %vm1721_vm13, %v368_v9 }
  0xfe   : > { %1102 = vmatprep.subr.bf16.mxu1 %v1323_v4  ;;  %1077 = vmatprep.mubr.msk.f32.mxu1 %vm1330_vm2, %v1328_v8  ;;  %vm580_vm2 = vcmask 1047556  }
  0xff   : > { %1030 = vmatpush1.msk.msra.mxu0 %vm388_vm12, %v381_v10  ;;  %vm581_vm15 = vmor %vm580_vm2, %vm579_vm1 }
 0x100   : > { %1031 = vmatmul.mubr.msk.f32.vlgmr.msra.gmra.mrb[0].mxu0 %vm1721_vm13, %v368_v9  ;;  %vm583_vm13 = vcmask 396288  }
 0x101   : > { %841 = vmatprep.mubr.f32.mxu0 %v1328_v8 }
 0x1d0   : > { %v535_v16 = vpop.f32.mrb[0].mxu1 }
 0x1d1   : > { %v541_v17 = vmax.f32 %v535_v16, 0.0  ;;  %v1066_v18 = vpop.f32.mrb[1].mxu1 }
 0x1d3   : > { %v464_v20 = vpop.f32.mrb[0].mxu0  ;;  %v560_v22 = vmul.f32 %v554_v15, %v541_v17 }
 0x1d4   : > { %v539_v23 = vmax.f32 %v464_v20, 0.0  ;;  %v466_v24 = vpop.f32.mrb[1].mxu0 }
 0x1d5   : > { %v540_v6 = vmax.f32 %v466_v24, 0.0  ;;  %571 = vrot.lane.b32.xlu1 %v560_v22, %s1331_s28 }
 0x1d6   : > { %v558_v25 = vmul.f32 %v546_v19, %v539_v23 }
 0x1d7   : > { %v559_v26 = vmul.f32 %v550_v21, %v540_v6 }
 0x1d9   : > { %v568_v27 = vcombine.low %v558_v25, %v559_v26 }
 0x1db   : > { %569 = vrot.lane.b32.xlu0 %v568_v27, %s1331_s28 }
 0x247   : > { %v572_v29 = vpop.permute.xlu1 %571 }
 0x24d   : > { %v570_v28 = vpop.permute.xlu0 %569 }
 0x24e   : > { %v573_v30 = vrot.slane %v570_v28, 4 }
 0x250   : > { %v575_v32 = vsel %vm574_vm14, %v573_v30, %v570_v28  ;;  %v576_v7 = vsel %vm574_vm14, %v573_v30, %v572_v29 }
 0x251   : > { %582 = vst.msk [vmem:[#allocation3] sm:$0xff] %vm581_vm15, %v575_v32 }
 0x252   : > { %584 = vst.msk [vmem:[#allocation3 + $0x8] sm:$0xf] %vm583_vm13, %v576_v7 }
 0x258   : > { %v585_v34 = vld [vmem:[#allocation3] sm:$0xff] }
 0x259   : > { %v586_v35 = vld [vmem:[#allocation3 + $0x8] sm:$0xf]  ;;  %v588_v37 = vcombine.high %v585_v34, %v585_v34  ;;  %590 = vst [vmem:[#allocation2] sm:$0xf] %v585_v34  ;;  %601 = vrot.lane.b32.xlu0 %v585_v34, %s1321_s6  ;;  %v597_v40 = vcombine.low %v585_v34, %v585_v34 }
 0x25a   : > { %v614_v36 = vld [vmem:[#allocation3 + $0x8] sm:$0xf]  ;;  %592 = vst.msk [vmem:[#allocation2 + $0x10] sm:$0xf] %vm243_vm0, %v586_v35 }
 0x25b   : > { %622 = vrot.lane.b32.xlu1 %v614_v36, %s1320_s23  ;;  %591 = vst [vmem:[#allocation2 + $0x8] sm:$0xf] %v588_v37  ;;  %v653_v38 = vld [vmem:[#allocation3 + $0x8] sm:$0xf] }
 0x25c   : > { %v692_v39 = vld [vmem:[#allocation3 + $0x8] sm:$0xf] }
 0x25d   : > { %640 = vrot.lane.b32.xlu0 %v585_v34, %s1322_s21  ;;  %v1184_v41 = vld [vmem:[#allocation3 + $0x8] ss:$0 sps:$4 sm:$0xff]  }
 0x25e   : > { %v1185_v42 = vld [vmem:[#allocation3 + $0x8] ss:$0 sps:$4 sm:$0xff]  }
 0x25f   : > { %618 = vrot.lane.b32.xlu1 %v585_v34, %s1320_s23  ;;  %v1186_v43 = vld [vmem:[#allocation3 + $0x8] ss:$0 sps:$4 sm:$0xff]  }
 0x260   : > { %v1187_v44 = vld [vmem:[#allocation3 + $0x8] ss:$0 sps:$4 sm:$0xff]  }
 0x261   : > { %661 = vrot.lane.b32.xlu0 %v653_v38, %s1324_s30  ;;  %v731_v45 = vld [vmem:[#allocation3 + $0x8] sm:$0xf] }
 0x263   : > { %679 = vrot.lane.b32.xlu1 %v585_v34, %s1325_s8 }
 0x265   : > { %700 = vrot.lane.b32.xlu0 %v692_v39, %s1326_s9 }
 0x267   : > { %718 = vrot.lane.b32.xlu1 %v585_v34, %s1327_s13 }
 0x269   : > { %620 = vrot.lane.b32.xlu0 %v588_v37, %s1320_s23  ;;  %s942_s23 = sshll.u32 %s226_s11, 4  ;;  %s1671_s23 = int_to_ptr.vmem [resolvable:$true] %s942_s23 }
 0x26a   : > { %s1246_s10 = scalar_lea.vmem %s1671_s23, 192 }
 0x26b   : > { %657 = vrot.lane.b32.xlu1 %v585_v34, %s1324_s30  ;;  %p1247_p6 = scmp.ne.s32.totalorder %s1671_s23, %s1246_s10 }
 0x26d   : > { %599 = vrot.lane.b32.xlu0 %v597_v40, %s1321_s6  ;;  %p1248_p9 = pnand %p1247_p6, %p1450_p8 }
 0x26f   : > { %696 = vrot.lane.b32.xlu1 %v585_v34, %s1326_s9  ;;  %p1249_p12 = pneg %p1248_p9 }
 0x271   : > { %638 = vrot.lane.b32.xlu0 %v597_v40, %s1322_s21 }
 0x273   : > { %603 = vrot.lane.b32.xlu1 %v1184_v41, %s1321_s6 }
 0x275   : > { %681 = vrot.lane.b32.xlu0 %v1186_v43, %s1325_s8 }
 0x277   : > { %642 = vrot.lane.b32.xlu1 %v1185_v42, %s1322_s21 }
 0x279   : > { %720 = vrot.lane.b32.xlu0 %v1187_v44, %s1327_s13  ;;  %v749_v44 = vld [vmem:[%s1715_s2] sm:$0xf] }
 0x27b   : > { %659 = vrot.lane.b32.xlu1 %v588_v37, %s1324_s30  ;;  %s1669_s30 = scalar_lea.hbm %s1717_s4, %s1111_s12 }
 0x27d   : > { %677 = vrot.lane.b32.xlu0 %v597_v40, %s1325_s8  ;;  %s928_s8 = scalar_lea.sflag [#allocation6], %s1499_s7 }
 0x27f   : > { %698 = vrot.lane.b32.xlu1 %v588_v37, %s1326_s9  ;;  %s1250_s9 = sshll.u32 %s1332_s19, 4  ;;  %s1251_s9 = int_to_ptr.vmem [resolvable:$false] %s1250_s9 }
 0x280   : > { %p1253_p13 = scmp.lt.s32.totalorder %s1671_s23, %s1251_s9 }
 0x281   : > { %716 = vrot.lane.b32.xlu0 %v597_v40, %s1327_s13  ;;  %s1252_s13 = scalar_lea.vmem %s1251_s9, 384 }
 0x282   : > { %p1254_p11 = scmp.lt.s32.totalorder %s1252_s13, %s1246_s10 }
 0x283   : > { %737 = vrot.lane.b32.xlu1 %v588_v37, %s1329_s27 }
 0x284   : > { %p1255_p5 = por %p1254_p11, %p1253_p13 }
 0x285   : > { %739 = vrot.lane.b32.xlu0 %v731_v45, %s1329_s27 }
 0x286   : > { %p1256_p10 = pnand %p1255_p5, %p1249_p12 }
 0x287   : > { %735 = vrot.lane.b32.xlu1 %v585_v34, %s1329_s27 }
 0x2cb   : > { %v602_v48 = vpop.permute.xlu0 %601 }
 0x2cd   : > { %v623_v47 = vpop.permute.xlu1 %622 }
 0x2ce   : > { %631 = vst.msk [vmem:[#allocation2 + $0x28] sm:$0xf] %vm243_vm0, %v623_v47 }
 0x2cf   : > { %v641_v50 = vpop.permute.xlu0 %640 }
 0x2d1   : > { %v619_v49 = vpop.permute.xlu1 %618 }
 0x2d3   : > { %v662_v52 = vpop.permute.xlu0 %661 }
 0x2d4   : > { %670 = vst.msk [vmem:[#allocation2 + $0x40] sm:$0xf] %vm243_vm0, %v662_v52 }
 0x2d5   : > { %v680_v51 = vpop.permute.xlu1 %679 }
 0x2d7   : > { %v701_v54 = vpop.permute.xlu0 %700 }
 0x2d8   : > { %709 = vst.msk [vmem:[#allocation2 + $0x58] sm:$0xf] %vm243_vm0, %v701_v54 }
 0x2d9   : > { %v719_v53 = vpop.permute.xlu1 %718 }
 0x2db   : > { %v621_v56 = vpop.permute.xlu0 %620 }
 0x2dc   : > { %v624_v57 = vsel %vm269_vm3, %v619_v49, %v621_v56  ;;  %v625_v58 = vsel %vm269_vm3, %v621_v56, %v623_v47  ;;  %vm1737_vm3 = vcmask 302080  }
 0x2dd   : > { %v658_v55 = vpop.permute.xlu1 %657  ;;  %629 = vst [vmem:[#allocation2 + $0x18] sm:$0xf] %v624_v57  ;;  %630 = vst [vmem:[#allocation2 + $0x20] sm:$0xf] %v625_v58 }
 0x2df   : > { %v600_v60 = vpop.permute.xlu0 %599 }
 0x2e0   : > { %v605_v61 = vsel %vm253_vm4, %v600_v60, %v602_v48 }
 0x2e1   : > { %v697_v59 = vpop.permute.xlu1 %696  ;;  %610 = vst [vmem:[#allocation2] sm:$0xf0] %v605_v61 }
 0x2e3   : > { %v639_v63 = vpop.permute.xlu0 %638 }
 0x2e4   : > { %v644_v1 = vsel %vm284_vm6, %v639_v63, %v641_v50 }
 0x2e5   : > { %v604_v62 = vpop.permute.xlu1 %603  ;;  %649 = vst [vmem:[#allocation2 + $0x18] sm:$0xf0] %v644_v1 }
 0x2e6   : > { %v606_v0 = vsel %vm253_vm4, %v602_v48, %v604_v62  ;;  %612 = vst.msk [vmem:[#allocation2 + $0x10] sm:$0xf0] %vm261_vm5, %v604_v62  ;;  %vm1738_vm4 = vmmov %vm1737_vm3 }
 0x2e7   : > { %611 = vst [vmem:[#allocation2 + $0x8] sm:$0xf0] %v606_v0  ;;  %v682_v3 = vpop.permute.xlu0 %681 }
 0x2e8   : > { %v684_v9 = vsel %vm314_vm8, %v680_v51, %v682_v3  ;;  %690 = vst.msk [vmem:[#allocation2 + $0x40] sm:$0xf0] %vm261_vm5, %v682_v3  ;;  %v750_v26 = vld [vmem:[#allocation2] sm:$0xff] }
 0x2e9   : > { %v643_v2 = vpop.permute.xlu1 %642  ;;  %689 = vst [vmem:[#allocation2 + $0x38] sm:$0xf0] %v684_v9 }
 0x2ea   : > { %v645_v5 = vsel %vm284_vm6, %v641_v50, %v643_v2  ;;  %651 = vst.msk [vmem:[#allocation2 + $0x28] sm:$0xf0] %vm261_vm5, %v643_v2 }
 0x2eb   : > { %650 = vst [vmem:[#allocation2 + $0x20] sm:$0xf0] %v645_v5  ;;  %v721_v11 = vpop.permute.xlu0 %720 }
 0x2ec   : > { %v723_v14 = vsel %vm344_vm10, %v719_v53, %v721_v11  ;;  %729 = vst.msk [vmem:[#allocation2 + $0x58] sm:$0xf0] %vm261_vm5, %v721_v11  ;;  %v753_v19 = vld [vmem:[#allocation2 + $0x18] sm:$0xff] }
 0x2ed   : > { %v660_v10 = vpop.permute.xlu1 %659  ;;  %728 = vst [vmem:[#allocation2 + $0x50] sm:$0xf0] %v723_v14  ;;  %v752_v17 = vld [vmem:[#allocation2 + $0x10] sm:$0xff]  ;;  %v1096_v27 = vpack.c.bf16 %v753_v19, %v750_v26 }
 0x2ee   : > { %v663_v12 = vsel %vm299_vm7, %v658_v55, %v660_v10  ;;  %v664_v13 = vsel %vm299_vm7, %v660_v10, %v662_v52  ;;  %v751_v24 = vld [vmem:[#allocation2 + $0x8] sm:$0xff] }
 0x2ef   : > { %668 = vst [vmem:[#allocation2 + $0x30] sm:$0xf] %v663_v12  ;;  %669 = vst [vmem:[#allocation2 + $0x38] sm:$0xf] %v664_v13  ;;  %v678_v16 = vpop.permute.xlu0 %677  ;;  %v758_v30 = vld [vmem:[#allocation2 + $0x40] sm:$0xff] }
 0x2f0   : > { %v683_v22 = vsel %vm314_vm8, %v678_v16, %v680_v51 }
 0x2f1   : > { %v699_v15 = vpop.permute.xlu1 %698  ;;  %v755_v18 = vld [vmem:[#allocation2 + $0x28] sm:$0xff]  ;;  %688 = vst [vmem:[#allocation2 + $0x30] sm:$0xf0] %v683_v22 }
 0x2f2   : > { %v702_v20 = vsel %vm329_vm9, %v697_v59, %v699_v15  ;;  %v703_v21 = vsel %vm329_vm9, %v699_v15, %v701_v54  ;;  %v1103_v23 = vpack.c.bf16 %v755_v18, %v752_v17  ;;  %v754_v6 = vld [vmem:[#allocation2 + $0x20] sm:$0xff] }
 0x2f3   : > { %707 = vst [vmem:[#allocation2 + $0x48] sm:$0xf] %v702_v20  ;;  %708 = vst [vmem:[#allocation2 + $0x50] sm:$0xf] %v703_v21  ;;  %v1094_v25 = vpack.c.bf16 %v754_v6, %v751_v24  ;;  %v717_v29 = vpop.permute.xlu0 %716  ;;  %v761_v32 = vld [vmem:[#allocation2 + $0x58] sm:$0xff] }
 0x2f4   : > { %1104 = vmatpush3.bf16.msra.mxu1 %v1103_v23  ;;  %v722_v7 = vsel %vm344_vm10, %v717_v29, %v719_v53  ;;  %v1106_v34 = vpack.c.bf16 %v761_v32, %v758_v30 }
 0x2f5   : > { %v738_v28 = vpop.permute.xlu1 %737  ;;  %1095 = vmatprep.subr.bf16.mxu0 %v1094_v25  ;;  %1105 = vmatprep.subr.bf16.mxu1 %v1323_v4  ;;  %727 = vst [vmem:[#allocation2 + $0x48] sm:$0xf0] %v722_v7 }
 0x2f6   : > { %1097 = vmatpush1.bf16.msra.mxu0 %v1096_v27  ;;  %v757_v39 = vld [vmem:[#allocation2 + $0x38] sm:$0xff] }
 0x2f7   : > { %v740_v36 = vpop.permute.xlu0 %739 }
 0x2f8   : > { %1107 = vmatpush3.bf16.msra.mxu1 %v1106_v34  ;;  %v742_v38 = vsel %vm359_vm11, %v738_v28, %v740_v36  ;;  %748 = vst.msk [vmem:[#allocation2 + $0x70] sm:$0xf] %vm243_vm0, %v740_v36  ;;  %v756_v41 = vld [vmem:[#allocation2 + $0x30] sm:$0xff] }
 0x2f9   : > { %v736_v35 = vpop.permute.xlu1 %735  ;;  %1075 = vmatprep.subr.mxu1 %v1328_v8  ;;  %747 = vst [vmem:[#allocation2 + $0x68] sm:$0xf] %v742_v38 }
 0x2fa   : > { %v741_v37 = vsel %vm359_vm11, %v736_v35, %v738_v28  ;;  %v760_v4 = vld [vmem:[#allocation2 + $0x50] sm:$0xff] }
 0x2fb   : > { %746 = vst [vmem:[#allocation2 + $0x60] sm:$0xf] %v741_v37  ;;  %v1098_v40 = vpack.c.bf16 %v760_v4, %v757_v39 }
 0x2fc   : > { %v759_v42 = vld [vmem:[#allocation2 + $0x48] sm:$0xff] }
 0x2fd   : > { %1099 = vmatprep.subr.bf16.mxu0 %v1098_v40  ;;  %v1100_v43 = vpack.c.bf16 %v759_v42, %v756_v41 }
 0x2ff   : > { %1101 = vmatpush1.bf16.msra.mxu0 %v1100_v43  ;;  %v764_v8 = vld [vmem:[#allocation2 + $0x70] sm:$0x1f] }
 0x300   : > { %1076 = vmatpush3.msk.msra.mxu1 %vm388_vm12, %v764_v8  ;;  %v763_v45 = vld [vmem:[#allocation2 + $0x68] sm:$0x1f] }
 0x301   : > { %1034 = vmatprep.subr.msk.mxu0 %vm388_vm12, %v763_v45  ;;  %1078 = vmatmul.mubr.msk.f32.vlgmr.msra.gmra.mrb[2].mxu1 %vm1737_vm3, %v749_v44 }
 0x302   : > { %v762_v47 = vld [vmem:[#allocation2 + $0x60] sm:$0x1f] }
 0x303   : > { %1035 = vmatpush1.msk.msra.mxu0 %vm388_vm12, %v762_v47 }
 0x304   : > { %1036 = vmatmul.mubr.msk.f32.vlgmr.msra.gmra.mrb[2].mxu0 %vm1738_vm4, %v749_v44 }
 0x3d4   : > { %v914_v48 = vpop.f32.mrb[2].mxu1 }
 0x3d5   : > { %v915_v49 = vadd.f32 %v914_v48, %v1558_v31  ;;  %v1079_v50 = vpop.f32.mrb[3].mxu1 }
 0x3d7   : > { %v920_v51 = vmax.f32 %v915_v49, 0.0  ;;  %v843_v52 = vpop.f32.mrb[2].mxu0 }
 0x3d8   : > { %v844_v53 = vadd.f32 %v843_v52, %v1575_v46  ;;  %v845_v54 = vpop.f32.mrb[3].mxu0 }
 0x3d9   : > { %v846_v55 = vadd.f32 %v845_v54, %v1563_v33  ;;  %926 = vst.msk [vmem:[%s226_s11 + $0x8] sm:$0xf] %vm243_vm0, %v920_v51 }
 0x3da   : > { %v918_v56 = vmax.f32 %v844_v53, 0.0 }
 0x3db   : > { %v919_v57 = vmax.f32 %v846_v55, 0.0 }
 0x3dd   : > { %v923_v58 = vcombine.low %v918_v56, %v919_v57 }
 0x3df   : > { %925 = vst [vmem:[%s226_s11] sm:$0xff] %v923_v58 }
 0x3e0   : > { %1259 = shalt.err (!%p1256_p10)
}
 0x3e1   : > { %s1260_s7 = scalar_lea.hbm %s1669_s30, 192  ;;  %s1264_s27 = scalar_lea.hbm %s1717_s4, 384 }
 0x3e2   : > { %p1261_p1 = scmp.ne.s32.totalorder %s1669_s30, %s1260_s7  ;;  %p1265_p3 = scmp.lt.u32.totalorder %s1669_s30, %s1717_s4 }
 0x3e3   : > { %p1266_p0 = scmp.lt.u32.totalorder %s1264_s27, %s1260_s7  ;;  %p1268_p6 = scmp.lt.u32.totalorder %s1260_s7, %s1669_s30 }
 0x3e4   : > { %p1262_p2 = pnand %p1261_p1, %p1450_p8 }
 0x3e5   : > { %p1267_p4 = por %p1266_p0, %p1265_p3 }
 0x3e6   : > { %p1263_p7 = pneg %p1262_p2 }
 0x3e7   : > { %p1269_p9 = por %p1268_p6, %p1267_p4 }
 0x3e9   : > { %p1270_p12 = pnand %p1269_p9, %p1263_p7 }
 0x3eb   : > { %1273 = shalt.err (!%p1270_p12)
}
 0x3ec   : > { %1118 = dma.vmem_to_hbm [thread:$0]  (%p1450_p8), %s1671_s23, 192, %s1669_s30, %s928_s8  }
 0x3ed PF: > { %s954_s29 = sand.u32 1, %s1304_s15   ;;  %p1739_p13 = scmp.ne.s32.totalorder %s1723_s22, 0 }
 0x3ee   : > { %p1740_p11 = scmp.ge.s32.totalorder %s1316_s18, 2  ;;  %s955_s11 = scalar_lea.sflag [#allocation6], %s954_s29 }
 0x3f0   : > { %p1129_p5 = pnand %p1740_p11, %p1739_p13 }
 0x3f2   : > { %1299 = dma.done.wait (!%p1129_p5), %s955_s11, 192  }
 0x3f3   : > { %1301 = vsyncadd (!%p1129_p5), %s955_s11, 4294967104  ;;  %p18_p10 = scmp.ge.s32.totalorder %s1406_s26, 4   ;;  %s1741_s15 = smov %s1308_s16 }
 0x3f4   : > { %s1742_s16 = smov %s1312_s17  ;;  %s1743_s17 = smov %s1442_s20 }
 0x3f5   : > { %s1744_s18 = smov %s1406_s26  ;;  %20 = sbr.rel (!%p18_p10) target bundleno = 6 (0x6), region = 86 }
 0x3fc   :  { %960 = vsyncpa [#allocation5], 1 }
 0x3fd   :  { %962 = vsyncpa [#allocation5 + $0x1], 1 }
 0x3fe   :  { %963 = vsyncpa [#allocation8], 1 }
 0x3ff   :  { %964 = vsyncpa [#allocation6], 1 }
 0x400   :  { %966 = vsyncpa [#allocation6 + $0x1], 1 }

</bundles_post_ra>
